<compile_context>
chip_gen: v7x
topology: tpu7x:2x2x1
jax: 0.10.0
libtpu: 0.0.40
codegen_flags: <defaults>
</compile_context>

<pallas_src>
import jax
import jax.numpy as jnp
from jax.experimental import pallas as pl
from jax.experimental.pallas import tpu as pltpu


def _conv_matmul_kernel(p_ref, w_ref, b_ref, o_ref):
    # p_ref: (1, KC, tm)    im2col patches, pixels on the lane axis
    # w_ref: (Cout, KC)     full weight matrix, resident in VMEM
    # b_ref: (Cout, 1)      bias, broadcast over lanes
    # o_ref: (1, Cout, tm)  lane-dense output tile
    acc = jnp.dot(w_ref[...], p_ref[0], preferred_element_type=jnp.float32)
    o_ref[0] = (acc + b_ref[...]).astype(o_ref.dtype)


def conv2d_k3s2p1(x, weight, bias, *, tm=512):
    """Conv2d(C, C, kernel_size=3, stride=2, padding=1), PyTorch semantics.

    x: (N, Cin, H, W); weight: (Cout, Cin, 3, 3); bias: (Cout,).
    Returns (N, Cout, Hout, Wout) with Hout = (H - 1)//2 + 1, Wout = (W - 1)//2 + 1.
    """
    N, Cin, H, W = x.shape
    Cout, _, kH, kW = weight.shape
    assert (kH, kW) == (3, 3)
    Hout = (H + 2 - 3) // 2 + 1
    Wout = (W + 2 - 3) // 2 + 1
    M_sp = Hout * Wout
    KC = Cin * kH * kW

    # im2col, pixels-on-lanes: patchesT[n, ci*9 + kh*3 + kw, oh*Wout + ow]
    #   = x_pad[n, ci, 2*oh + kh, 2*ow + kw]
    x_pad = jnp.pad(x, ((0, 0), (0, 0), (1, 1), (1, 1)))
    cols = [
        x_pad[:, :, kh:kh + 2 * Hout:2, kw:kw + 2 * Wout:2]
        for kh in range(kH) for kw in range(kW)
    ]
    patches = jnp.stack(cols, axis=2).reshape(N, KC, M_sp)  # (N, Cin*9, Hout*Wout)

    w2d = weight.reshape(Cout, KC)   # columns ordered (ci, kh, kw) -> matches patches rows
    b2d = bias.reshape(Cout, 1)

    # Lane-dense pixel tile: full spatial extent if small, else a multiple of 128.
    if M_sp <= tm:
        tm = M_sp
    else:
        tm = max(128, (tm // 128) * 128)
    grid = (N, pl.cdiv(M_sp, tm))

    y = pl.pallas_call(
        _conv_matmul_kernel,
        out_shape=jax.ShapeDtypeStruct((N, Cout, M_sp), x.dtype),
        grid_spec=pltpu.PrefetchScalarGridSpec(
            num_scalar_prefetch=0,
            grid=grid,
            in_specs=[
                pl.BlockSpec((1, KC, tm), lambda n, j: (n, 0, j)),
                pl.BlockSpec((Cout, KC), lambda n, j: (0, 0)),
                pl.BlockSpec((Cout, 1), lambda n, j: (0, 0)),
            ],
            out_specs=pl.BlockSpec((1, Cout, tm), lambda n, j: (n, 0, j)),
        ),
        compiler_params=pltpu.CompilerParams(
            dimension_semantics=("parallel", "parallel")),
    )(patches, w2d, b2d)

    # (N, Cout, Hout*Wout) -> (N, Cout, Hout, Wout): contiguous reshape, no transpose.
    return y.reshape(N, Cout, Hout, Wout)


def _reference(x, weight, bias):
    # Pure-JAX reference of Conv2d(k=3, s=2, p=1), NCHW / OIHW (PyTorch convention).
    y = jax.lax.conv_general_dilated(
        x, weight, window_strides=(2, 2), padding=((1, 1), (1, 1)),
        dimension_numbers=("NCHW", "OIHW", "NCHW"))
    return y + bias[None, :, None, None]


if __name__ == "__main__":
    key = jax.random.PRNGKey(0)
    k_x, k_w, k_b = jax.random.split(key, 3)

    N, C, H, W = 2, 4, 16, 16
    x = jax.random.normal(k_x, (N, C, H, W), dtype=jnp.float32)
    # Conv2d(C, C, kernel_size=3, stride=2, padding=1) parameters:
    #   weight: (out_channels, in_channels, 3, 3), bias: (out_channels,)
    weight = jax.random.normal(k_w, (C, C, 3, 3), dtype=jnp.float32) * 0.1
    bias = jax.random.normal(k_b, (C,), dtype=jnp.float32) * 0.1

    out = conv2d_k3s2p1(x, weight, bias)
    out = jax.block_until_ready(out)

    ref = _reference(x, weight, bias)
    assert out.shape == (N, C, (H + 1) // 2, (W + 1) // 2)
    assert jnp.allclose(out, ref, atol=1e-5, rtol=1e-5)

    print("KERNEL_OK")
</pallas_src>

<mosaic_0001>
module attributes {stable_mosaic.version = 11 : i64} {
  func.func @_conv_matmul_kernel(%arg0: i32, %arg1: i32, %arg2: memref<1x36x64xf32, #tpu.memory_space<vmem>>, %arg3: memref<4x36xf32, #tpu.memory_space<vmem>>, %arg4: memref<4x1xf32, #tpu.memory_space<vmem>>, %arg5: memref<1x4x64xf32, #tpu.memory_space<vmem>>) attributes {dimension_semantics = [#tpu.dimension_semantics<parallel>, #tpu.dimension_semantics<parallel>], iteration_bounds = array<i64: 2, 1>, scalar_prefetch = 0 : i64, scratch_operands = 0 : i64, tpu.core_type = #tpu.core_type<tc>, window_params = [{transform_indices = @transform_0, window_bounds = array<i64: 1, 36, 64>}, {pipeline_mode = #tpu.pipeline_mode<synchronous>, transform_indices = @transform_1, window_bounds = array<i64: 4, 36>}, {pipeline_mode = #tpu.pipeline_mode<synchronous>, transform_indices = @transform_2, window_bounds = array<i64: 4, 1>}, {transform_indices = @transform_3, window_bounds = array<i64: 1, 4, 64>}]} {
    %c0 = arith.constant 0 : index
    %c0_0 = arith.constant 0 : index
    %0 = vector.load %arg3[%c0, %c0_0] : memref<4x36xf32, #tpu.memory_space<vmem>>, vector<4x36xf32>
    %c0_1 = arith.constant 0 : index
    %c0_2 = arith.constant 0 : index
    %c0_3 = arith.constant 0 : index
    %1 = vector.load %arg2[%c0_1, %c0_2, %c0_3] : memref<1x36x64xf32, #tpu.memory_space<vmem>>, vector<1x36x64xf32>
    %2 = vector.shape_cast %1 : vector<1x36x64xf32> to vector<36x64xf32>
    %cst = arith.constant dense<0.000000e+00> : vector<4x64xf32>
    %3 = tpu.matmul %0, %2, %cst {dimension_numbers = #tpu.dot_dimension_numbers<[1], [0], [0], [1], [0, 0, 1, 1], [], []>} : vector<4x36xf32>, vector<36x64xf32>, vector<4x64xf32> -> vector<4x64xf32>
    %c0_4 = arith.constant 0 : index
    %c0_5 = arith.constant 0 : index
    %4 = vector.load %arg4[%c0_4, %c0_5] : memref<4x1xf32, #tpu.memory_space<vmem>>, vector<4x1xf32>
    %5 = vector.broadcast %4 : vector<4x1xf32> to vector<4x64xf32>
    %6 = arith.addf %3, %5 : vector<4x64xf32>
    %c0_6 = arith.constant 0 : index
    %c0_7 = arith.constant 0 : index
    %c0_8 = arith.constant 0 : index
    %7 = vector.load %arg5[%c0_6, %c0_7, %c0_8] : memref<1x4x64xf32, #tpu.memory_space<vmem>>, vector<1x4x64xf32>
    %8 = vector.shape_cast %7 : vector<1x4x64xf32> to vector<4x64xf32>
    %9 = vector.shape_cast %6 : vector<4x64xf32> to vector<1x4x64xf32>
    tpu.vector_store %arg5[%c0_6, %c0_7, %c0_8], %9 {strides = array<i32>} : memref<1x4x64xf32, #tpu.memory_space<vmem>>, vector<1x4x64xf32>,
    return
  }
  func.func @transform_0(%arg0: i32, %arg1: i32) -> (i32, i32, i32) {
    %c0_i32 = arith.constant 0 : i32
    %c0_i32_0 = arith.constant 0 : i32
    return %arg0, %c0_i32, %arg1 : i32, i32, i32
  }
  func.func @transform_1(%arg0: i32, %arg1: i32) -> (i32, i32) {
    %c0_i32 = arith.constant 0 : i32
    %c0_i32_0 = arith.constant 0 : i32
    %c0_i32_1 = arith.constant 0 : i32
    return %c0_i32, %c0_i32_0 : i32, i32
  }
  func.func @transform_2(%arg0: i32, %arg1: i32) -> (i32, i32) {
    %c0_i32 = arith.constant 0 : i32
    %c0_i32_0 = arith.constant 0 : i32
    %c0_i32_1 = arith.constant 0 : i32
    return %c0_i32, %c0_i32_0 : i32, i32
  }
  func.func @transform_3(%arg0: i32, %arg1: i32) -> (i32, i32, i32) {
    %c0_i32 = arith.constant 0 : i32
    %c0_i32_0 = arith.constant 0 : i32
    return %arg0, %c0_i32, %arg1 : i32, i32, i32
  }
}

</mosaic_0001>

<bundles_post_ra>
// kernel: tpu_custom_call.1
= control target key start
LH: loop header
LB: loop body
LE: loop exit
PB: predicated region body
PF: predicated region fallthrough
CT: control target
= control target key end

     0   :  { %8 = vsyncpa [#allocation3], 0  ;;  %s697_s0 = inlined_call_operand.vmem [shape: f32[2,36,64], index: 0, kind: input, shape index: {}]   ;;  %s698_s1 = inlined_call_operand.vmem [shape: f32[4,36], index: 1, kind: input, shape index: {}]   ;;  %s699_s2 = inlined_call_operand.vmem [shape: f32[4,1], index: 2, kind: input, shape index: {}]   ;;  %s700_s3 = inlined_call_operand.hbm [shape: f32[2,4,64], index: 3, kind: output, shape index: {}]  }
   0x1   :  { %10 = vsyncpa [#allocation3 + $0x1], 0  ;;  %s579_s12 = smov 0   ;;  %s581_s13 = smov 0  }
   0x2   :  { %s583_s14 = smov 0   ;;  %s585_s15 = smov 0  }
   0x3   :  { %s587_s16 = smov 0   ;;  %s589_s17 = smov 0  }
   0x4 LB: > { %s375_s18 = sadd.s32 4294967295, %s552_s17   ;;  %s376_s19 = sadd.s32 4294967294, %s552_s17   ;;  %s552_s17 = sphi %s589_s17, %s16_s17   ;;  %s548_s16 = sphi %s587_s16, %s707_s16   ;;  %s544_s15 = sphi %s585_s15, %s706_s15   ;;  %s540_s14 = sphi %s583_s14, %s705_s14   ;;  %s536_s13 = sphi %s581_s13, %s704_s13   ;;  %s532_s12 = sphi %s579_s12, %s703_s12  }
   0x5   : > { %s28_s20 = sadd.s32 1, %s548_s16  ;;  %s107_s21 = sadd.s32 1, %s540_s14 }
   0x6   : > { %p30_p0 = scmp.ge.s32.totalorder %s28_s20, 2  ;;  %p117_p1 = scmp.ne.s32.totalorder %s540_s14, %s536_s13 }
   0x7   : > { %p118_p2 = scmp.eq.s32.totalorder %s375_s18, 1  ;;  %p123_p3 = scmp.ne.s32.totalorder %s536_s13, %s532_s12 }
   0x8   : > { %s709_s20 = smov (%p30_p0, %s28_s20), 0  ;;  %p124_p5 = scmp.eq.s32.totalorder %s376_s19, 1 }
   0x9   : > { %p619_p4 = por %p118_p2, %p117_p1  ;;  %s102_s23 = ssub.s32 %s548_s16, %s709_s20 }
   0xa   : > { %p379_p6 = scmp.ge.s32.totalorder %s552_s17, 1  ;;  %p105_p7 = scmp.eq.s32.totalorder %s102_s23, 0 }
   0xb   : > { %p626_p8 = por %p124_p5, %p123_p3  ;;  %p159_p9 = scmp.lt.s32.totalorder %s552_s17, 3 }
   0xc   : > { %s632_s25 = scalar_select %p105_p7, %s540_s14, %s107_s21  }
   0xd   : > { %p160_p10 = pnand %p379_p6, %p159_p9 }
   0xe   : > { %p186_p11 = scmp.lt.s32.totalorder (!%p160_p10), %s544_s15, 1  ;;  %v554_v0 = vmov (!%p160_p10), 0.0|0.0   ;;  %vm555_vm0 = vmmov (!%p160_p10), 0   ;;  %v556_v1 = vmov (!%p160_p10), 0.0   ;;  %v200_v2 = vld [vmem:[%s699_s2] sm:$0xf] (!%p160_p10) }
   0xf   : > { %163 = sbr.rel (%p160_p10) target bundleno = 267 (0x10b), region = 32  ;;  %407 = vmatprep.subr.bf16.mxu0 (!%p160_p10), %v554_v0  ;;  %404 = vmatprep.mubr.msk.f32.mxu0 (!%p160_p10), %vm555_vm0, %v556_v1  ;;  %v557_v3 = vmov (!%p160_p10), 0   ;;  %vm210_vm1 = vcmask (!%p160_p10), 1043456   ;;  %v194_v11 = vld [vmem:[%s698_s1] sm:$0xf] (!%p160_p10)  ;;  %vm206_vm2 = vcmask (!%p160_p10), 293888  }
  0x10   : > { %473 = vset.pattern.permute.xlu0 (!%p160_p10), %v557_v3  ;;  %s183_s8 = sand.u32 (!%p160_p10), 1, %s536_s13   ;;  %s385_s10 = sshll.u32 (!%p160_p10), %s544_s15, 6  ;;  %vm284_vm3 = vcmask (!%p160_p10), 519168  }
  0x11   : > { %203 = vperm.xlu0 (!%p160_p10), %473, %v200_v2   ;;  %s380_s9 = sshll.u32 (!%p160_p10), %s183_s8, 2  ;;  %s650_s23 = scalar_lea.hbm (!%p160_p10), %s700_s3, %s385_s10 }
  0x12   : > { %s185_s11 = scalar_lea.vmem (!%p160_p10), [#allocation2], %s380_s9  ;;  %s287_s26 = scalar_lea.sflag (!%p160_p10), [#allocation3], %s183_s8 }
  0x13   : > { %s301_s18 = sshll.u32 (!%p160_p10), %s185_s11, 4  ;;  %s652_s18 = int_to_ptr.vmem [resolvable:$true] %s301_s18 }
  0x14   : > { %s474_s27 = scalar_lea.vmem (!%p160_p10), %s652_s18, 64 }
  0x15   : > { %p475_p12 = scmp.ne.s32.totalorder (!%p160_p10), %s652_s18, %s474_s27 }
  0x16   : > { %s187_s28 = scalar_select %p186_p11, %s544_s15, 1 }
  0x17   : > { %p476_p13 = pnand %p475_p12, %p619_p4  ;;  %s558_s15 = smov [#allocation2]  }
  0x18   : > { %s413_s29 = smul.u32 40, %s187_s28  ;;  %s478_s28 = sshll.u32 %s558_s15, 4  ;;  %s479_s28 = int_to_ptr.vmem [resolvable:$false] %s478_s28 }
  0x19   : > { %p477_p0 = pneg %p476_p13  ;;  %p481_p1 = scmp.lt.s32.totalorder %s652_s18, %s479_s28 }
  0x1a   : > { %s193_s5 = scalar_lea.vmem %s697_s0, %s413_s29  ;;  %s480_s29 = scalar_lea.vmem %s479_s28, 128 }
  0x1b   : > { %v195_v4 = vld [vmem:[%s193_s5] sm:$0xff]  ;;  %v196_v5 = vld [vmem:[%s193_s5 + $0x8] sm:$0xff]  ;;  %v197_v6 = vld [vmem:[%s193_s5 + $0x10] sm:$0xff]  ;;  %p482_p2 = scmp.lt.s32.totalorder %s480_s29, %s474_s27 }
  0x1c   : > { %v408_v7 = vpack.c.bf16 %v196_v5, %v195_v4  ;;  %v198_v8 = vld [vmem:[%s193_s5 + $0x18] sm:$0xff]  ;;  %v199_v10 = vld [vmem:[%s193_s5 + $0x20] sm:$0xf] }
  0x1d   : > { %v411_v9 = vpack.c.bf16 %v198_v8, %v197_v6  ;;  %p483_p3 = por %p482_p2, %p481_p1 }
  0x1e   : > { %409 = vmatpush3.bf16.msra.mxu0 %v408_v7 }
  0x1f   : > { %410 = vmatprep.subr.bf16.mxu0 %v554_v0  ;;  %p484_p5 = pnand %p483_p3, %p477_p0 }
  0x22   : > { %412 = vmatpush3.bf16.msra.mxu0 %v411_v9 }
  0x23   : > { %402 = vmatprep.subr.mxu0 %v556_v1 }
  0x26   : > { %403 = vmatpush3.msk.msra.mxu0 %vm210_vm1, %v199_v10 }
  0x27   : > { %405 = vmatmul.mubr.msk.f32.vlgmr.msra.gmra.mrb[0].mxu0 %vm206_vm2, %v194_v11 }
  0x90   : > { %v204_v12 = vpop.permute.xlu0 %203 }
  0xfa   : > { %v280_v13 = vpop.f32.mrb[0].mxu0 }
  0xfb   : > { %v281_v14 = vadd.f32 %v280_v13, %v204_v12  ;;  %v406_v15 = vpop.f32.mrb[1].mxu0 }
  0xfd   : > { %285 = vst.msk [vmem:[%s185_s11] sm:$0xf] %vm284_vm3, %v281_v14 }
  0xfe   : > { %487 = shalt.err (!%p484_p5)
}
  0xff   : > { %s488_s30 = scalar_lea.hbm %s650_s23, 64  ;;  %s492_s6 = scalar_lea.hbm %s700_s3, 128 }
 0x100   : > { %p489_p6 = scmp.ne.s32.totalorder %s650_s23, %s488_s30  ;;  %p493_p10 = scmp.lt.u32.totalorder %s650_s23, %s700_s3 }
 0x101   : > { %p494_p11 = scmp.lt.u32.totalorder %s492_s6, %s488_s30  ;;  %p496_p13 = scmp.lt.u32.totalorder %s488_s30, %s650_s23 }
 0x102   : > { %p490_p7 = pnand %p489_p6, %p619_p4 }
 0x103   : > { %p495_p12 = por %p494_p11, %p493_p10 }
 0x104   : > { %p491_p9 = pneg %p490_p7 }
 0x105   : > { %p497_p0 = por %p496_p13, %p495_p12 }
 0x107   : > { %p498_p1 = pnand %p497_p0, %p491_p9 }
 0x109   : > { %501 = shalt.err (!%p498_p1)
}
 0x10a   : > { %414 = dma.vmem_to_hbm [thread:$0]  (%p619_p4), %s652_s18, 64, %s650_s23, %s287_s26  }
 0x10b PF: > { %p420_p2 = scmp.ge.s32.totalorder %s552_s17, 2  ;;  %s313_s9 = sand.u32 1, %s532_s12  }
 0x10c   : > { %s314_s10 = scalar_lea.sflag [#allocation3], %s313_s9 }
 0x10d   : > { %p417_p3 = pnand %p420_p2, %p626_p8 }
 0x10f   : > { %527 = dma.done.wait (!%p417_p3), %s314_s10, 64  }
 0x110   : > { %529 = vsyncadd (!%p417_p3), %s314_s10, 4294967232  ;;  %s16_s17 = sadd.s32 1, %s552_s17   ;;  %s703_s12 = smov %s536_s13 }
 0x111   : > { %p13_p5 = scmp.ge.s32.totalorder %s16_s17, 4   ;;  %s704_s13 = smov %s540_s14 }
 0x112   : > { %s705_s14 = smov %s632_s25  ;;  %s706_s15 = smov %s548_s16 }
 0x113   : > { %s707_s16 = smov %s709_s20  ;;  %15 = sbr.rel (!%p13_p5) target bundleno = 4 (0x4), region = 67 }
 0x11a   :  { %319 = vsyncpa [#allocation3], 1 }
 0x11b   :  { %321 = vsyncpa [#allocation3 + $0x1], 1 }

</bundles_post_ra>
